<compile_context>
chip_gen: v6e
topology: v6e:2x2x1
jax: 0.10.0
libtpu: 0.0.40
codegen_flags: <defaults>
</compile_context>

<pallas_src>
import functools
import math

import jax
import jax.numpy as jnp
from jax.experimental import pallas as pl
from jax.experimental.pallas import tpu as pltpu

# ---------------- small, Llama-like synthetic config ----------------
BATCH = 2
SEQ = 8
HIDDEN = 128          # lane-aligned hidden dim -> unmasked, lane-dense stores
INTER = 256           # MXU-width aligned intermediate dim
N_HEADS = 4
HEAD_DIM = HIDDEN // N_HEADS
N_LAYERS = 2
VOCAB = 512
EPS = 1e-6

VMEM_LIMIT = 32 * 1024 * 1024  # explicit scoped-VMEM budget (v7x-safe)


def _pick_tile(total, preferred):
    """Largest preferred tile that evenly divides `total`, else one full block."""
    for t in preferred:
        if t <= total and total % t == 0:
            return t
    # TODO(synk): at shapes where no preferred tile divides, a remainder block
    # with masked stores would be better than one giant block.
    return total


# ---------------- Pallas kernels (hot path) ----------------
def _mlp_kernel(x_ref, ln_ref, wgu_ref, wd_ref, o_ref, *, add_residual):
    """Fused RMSNorm + SwiGLU MLP (+ optional residual) for one row tile.

    x_ref:  [R, D]   bf16 residual-stream activations (pre-norm)
    ln_ref: [1, D]   f32 post_attention_layernorm weight
    wgu_ref:[D, 2I]  bf16 concat(gate_proj, up_proj)
    wd_ref: [I, D]   bf16 down_proj
    """
    inter = wd_ref.shape[0]
    # RMSNorm prologue in f32 (EUP rsqrt + VPU multiplies, free next to MXU).
    x = x_ref[...].astype(jnp.float32)
    var = jnp.mean(x * x, axis=-1, keepdims=True)
    xn = (x * jax.lax.rsqrt(var + EPS) * ln_ref[...]).astype(jnp.bfloat16)
    # Single fused gate/up matmul on the MXU, f32 accumulation.
    gu = jnp.dot(xn, wgu_ref[...], preferred_element_type=jnp.float32)
    g = gu[:, :inter]
    u = gu[:, inter:]
    h = (g * jax.nn.sigmoid(g)) * u                    # SiLU(gate) * up, in f32
    y = jnp.dot(h.astype(jnp.bfloat16), wd_ref[...],
                preferred_element_type=jnp.float32)
    if add_residual:
        y = y + x                                      # fused residual add
    o_ref[...] = y.astype(o_ref.dtype)


def fused_rmsnorm_swiglu(x, ln_w, wgu, wd, *, add_residual):
    """x: [B, S, D] -> [B, S, D].  Row-tiled; weights stay VMEM-resident."""
    b, s, d = x.shape
    inter = wd.shape[0]
    rows = b * s
    x2 = x.reshape(rows, d)                       # no pad, no extra HBM pass
    ln2d = ln_w.reshape(1, d).astype(jnp.float32)
    row_tile = _pick_tile(rows, (512, 256, 128))  # large M tiles; toy -> 1 block
    kernel = functools.partial(_mlp_kernel, add_residual=add_residual)
    out = pl.pallas_call(
        kernel,
        out_shape=jax.ShapeDtypeStruct((rows, d), x.dtype),
        grid=(rows // row_tile,),
        in_specs=[
            pl.BlockSpec((row_tile, d), lambda i: (i, 0)),
            pl.BlockSpec((1, d), lambda i: (0, 0)),
            pl.BlockSpec((d, 2 * inter), lambda i: (0, 0)),
            pl.BlockSpec((inter, d), lambda i: (0, 0)),
        ],
        out_specs=pl.BlockSpec((row_tile, d), lambda i: (i, 0)),
        compiler_params=pltpu.CompilerParams(
            dimension_semantics=("parallel",),
            vmem_limit_bytes=VMEM_LIMIT),
    )(x2, ln2d, wgu, wd)
    # TODO(synk): at real Llama sizes (D=4096, I~14336) add a K/N reduction
    # grid axis over INTER with an f32 VMEM accumulator so weights stream.
    return out.reshape(b, s, d)


def _lm_head_kernel(x_ref, ln_ref, w_ref, o_ref):
    """Fused final RMSNorm + LM head matmul.

    x_ref:  [R, D]  bf16 last-token hidden states (pre final norm)
    ln_ref: [1, D]  f32 model.norm weight
    w_ref:  [D, Vt] bf16 LM-head tile
    """
    x = x_ref[...].astype(jnp.float32)
    var = jnp.mean(x * x, axis=-1, keepdims=True)
    xn = (x * jax.lax.rsqrt(var + EPS) * ln_ref[...]).astype(jnp.bfloat16)
    o_ref[...] = jnp.dot(xn, w_ref[...],
                         preferred_element_type=jnp.float32).astype(o_ref.dtype)


def lm_head_pallas(x, ln_w, w):
    """x: [rows, D] bf16 (pre-norm), w: [D, V] bf16 -> f32 logits [rows, V]."""
    rows, d = x.shape
    v = w.shape[1]
    ln2d = ln_w.reshape(1, d).astype(jnp.float32)
    vocab_tile = _pick_tile(v, (2048, 1024, 512))   # >=512-wide N tiles; toy -> 1 block
    return pl.pallas_call(
        _lm_head_kernel,
        out_shape=jax.ShapeDtypeStruct((rows, v), jnp.float32),
        grid=(v // vocab_tile,),
        in_specs=[
            pl.BlockSpec((rows, d), lambda j: (0, 0)),
            pl.BlockSpec((1, d), lambda j: (0, 0)),
            pl.BlockSpec((d, vocab_tile), lambda j: (0, j)),
        ],
        out_specs=pl.BlockSpec((rows, vocab_tile), lambda j: (0, j)),
        compiler_params=pltpu.CompilerParams(
            dimension_semantics=("parallel",),
            vmem_limit_bytes=VMEM_LIMIT),
    )(x, ln2d, w)


# ---------------- LlamaMLPInferenceWrapper.forward semantics ----------------
def llama_mlp_inference_wrapper(x, ln_w, mlp_params, *, mini_s=8, chunk_size=4096,
                                chunk_mode=True, is_final_mlp=False):
    """Matches LlamaMLPInferenceWrapper.forward.

    The MLP is pointwise over tokens, so the chunk loop of the PyTorch wrapper
    is realized as the row axis of a single pallas_call grid (one launch, one
    weight stream) instead of a Python loop of separate kernel launches.
    """
    wgu, wd = mlp_params
    bsz, q_len, _ = x.shape
    if is_final_mlp:
        x = x[:, -1:, :]                                  # [B, 1, D]
        # Residual add happens outside (broadcast over the full [B,S,D] residual).
        return fused_rmsnorm_swiglu(x, ln_w, wgu, wd, add_residual=False)
    if chunk_mode:
        cs = max(chunk_size // max(bsz, 1), 1024)
    else:
        cs = math.ceil(q_len / mini_s)
    del cs  # chunking is absorbed into the row-tiled grid (bit-identical result)
    # Residual add fused into the kernel: returns x + MLP(RMSNorm(x)).
    return fused_rmsnorm_swiglu(x, ln_w, wgu, wd, add_residual=True)


# ---------------- plain-JAX glue (unchanged by the MSI wrapper) ----------------
def rms_norm(x, w):
    xf = x.astype(jnp.float32)
    var = jnp.mean(jnp.square(xf), axis=-1, keepdims=True)
    return (xf * jax.lax.rsqrt(var + EPS) * w).astype(x.dtype)


def causal_self_attention(x, p):
    # TODO(synk): RoPE and KV-cache of the wrapped LlamaModel are omitted;
    # attention is untouched by minisequence_inference so it stays as JAX glue.
    b, s, d = x.shape
    qkv = x @ p["wqkv"]                                    # fused QKV GEMM
    q, k, v = jnp.split(qkv, 3, axis=-1)
    q = q.reshape(b, s, N_HEADS, HEAD_DIM).transpose(0, 2, 1, 3)
    k = k.reshape(b, s, N_HEADS, HEAD_DIM).transpose(0, 2, 1, 3)
    v = v.reshape(b, s, N_HEADS, HEAD_DIM).transpose(0, 2, 1, 3)
    # Scores / softmax in f32; bf16 operands feed the MXU with f32 accumulation.
    scores = jnp.einsum("bhqd,bhkd->bhqk", q, k,
                        preferred_element_type=jnp.float32) / math.sqrt(HEAD_DIM)
    mask = jnp.tril(jnp.ones((s, s), dtype=bool))
    scores = jnp.where(mask[None, None], scores, -1e30)
    attn = jax.nn.softmax(scores, axis=-1).astype(x.dtype)
    o = jnp.einsum("bhqk,bhkd->bhqd", attn, v).transpose(0, 2, 1, 3).reshape(b, s, d)
    return o @ p["wo"]


def decoder_layer(h, p, is_final_mlp):
    residual = h
    h = rms_norm(h, p["ln1"])
    h = residual + causal_self_attention(h, p)
    # ln2 (post_attention_layernorm) is fused into the Pallas MLP kernel;
    # for non-final layers the residual add is fused in as well.
    if is_final_mlp:
        mlp_out = llama_mlp_inference_wrapper(h, p["ln2"], p["mlp"],
                                              is_final_mlp=True)
        # mlp_out is [B,1,D] and broadcasts over the [B,S,D] residual —
        # identical to PyTorch broadcasting in the decoder layer.
        return h + mlp_out
    return llama_mlp_inference_wrapper(h, p["ln2"], p["mlp"], is_final_mlp=False)


def minisequence_inference_forward(params, input_ids):
    h = params["embed"][input_ids]                         # [B, S, D] bf16
    for li, lp in enumerate(params["layers"]):
        is_final_mlp = li == len(params["layers"]) - 1     # last LlamaMLP wrapped final
        h = decoder_layer(h, lp, is_final_mlp)
    h = h[:, -1:, :]                                       # CausalLM wrapper: last token only
    # final_norm fused into the LM-head kernel (per-token norm:
    # slice-then-norm == norm-then-slice).
    logits = lm_head_pallas(h.reshape(-1, HIDDEN), params["final_norm"],
                            params["lm_head"])
    return logits.reshape(h.shape[0], 1, VOCAB)


# ---------------- deterministic parameter init ----------------
def init_params(key):
    def dense(k, shape, scale=0.02):
        return (scale * jax.random.normal(k, shape, dtype=jnp.float32)
                ).astype(jnp.bfloat16)

    keys = jax.random.split(key, 2 + N_LAYERS)
    params = {
        "embed": dense(keys[0], (VOCAB, HIDDEN)),
        "lm_head": dense(keys[1], (HIDDEN, VOCAB)),
        "final_norm": jnp.ones((HIDDEN,), jnp.float32),
        "layers": [],
    }
    for li in range(N_LAYERS):
        lk = jax.random.split(keys[2 + li], 7)
        wq = dense(lk[0], (HIDDEN, HIDDEN))
        wk = dense(lk[1], (HIDDEN, HIDDEN))
        wv = dense(lk[2], (HIDDEN, HIDDEN))
        gate = dense(lk[4], (HIDDEN, INTER))               # gate_proj
        up = dense(lk[5], (HIDDEN, INTER))                 # up_proj
        params["layers"].append({
            "ln1": jnp.ones((HIDDEN,), jnp.float32),
            "ln2": jnp.ones((HIDDEN,), jnp.float32),
            "wqkv": jnp.concatenate([wq, wk, wv], axis=1),  # fused [D, 3D]
            "wo": dense(lk[3], (HIDDEN, HIDDEN)),
            "mlp": (jnp.concatenate([gate, up], axis=1),   # fused [D, 2I]
                    dense(lk[6], (INTER, HIDDEN))),        # down_proj
        })
    return params


if __name__ == "__main__":
    key = jax.random.PRNGKey(0)
    k_ids, k_params = jax.random.split(key)
    params = init_params(k_params)
    input_ids = jax.random.randint(k_ids, (BATCH, SEQ), 0, VOCAB, dtype=jnp.int32)

    fwd = jax.jit(minisequence_inference_forward)
    logits = fwd(params, input_ids)
    jax.block_until_ready(logits)
    assert logits.shape == (BATCH, 1, VOCAB)
    assert bool(jnp.all(jnp.isfinite(logits.astype(jnp.float32))))
    print("KERNEL_OK")
</pallas_src>

<mosaic_0001>
module attributes {stable_mosaic.version = 11 : i64} {
  func.func @_mlp_kernel(%arg0: i32, %arg1: memref<16x128xbf16, #tpu.memory_space<vmem>>, %arg2: memref<1x128xf32, #tpu.memory_space<vmem>>, %arg3: memref<128x512xbf16, #tpu.memory_space<vmem>>, %arg4: memref<256x128xbf16, #tpu.memory_space<vmem>>, %arg5: memref<16x128xbf16, #tpu.memory_space<vmem>>) attributes {dimension_semantics = [#tpu.dimension_semantics<parallel>], iteration_bounds = array<i64: 1>, scalar_prefetch = 0 : i64, scratch_operands = 0 : i64, tpu.core_type = #tpu.core_type<tc>, window_params = [{transform_indices = @transform_0, window_bounds = array<i64: 16, 128>}, {pipeline_mode = #tpu.pipeline_mode<synchronous>, transform_indices = @transform_1, window_bounds = array<i64: 1, 128>}, {pipeline_mode = #tpu.pipeline_mode<synchronous>, transform_indices = @transform_2, window_bounds = array<i64: 128, 512>}, {pipeline_mode = #tpu.pipeline_mode<synchronous>, transform_indices = @transform_3, window_bounds = array<i64: 256, 128>}, {transform_indices = @transform_4, window_bounds = array<i64: 16, 128>}]} {
    %c0 = arith.constant 0 : index
    %c0_0 = arith.constant 0 : index
    %0 = vector.load %arg1[%c0, %c0_0] : memref<16x128xbf16, #tpu.memory_space<vmem>>, vector<16x128xbf16>
    %1 = arith.extf %0 : vector<16x128xbf16> to vector<16x128xf32>
    %2 = arith.mulf %1, %1 : vector<16x128xf32>
    %cst = arith.constant dense<0.000000e+00> : vector<16xf32>
    %3 = vector.multi_reduction <add>, %2, %cst [1] : vector<16x128xf32> to vector<16xf32>
    %4 = vector.shape_cast %3 : vector<16xf32> to vector<16x1xf32>
    %cst_1 = arith.constant 1.280000e+02 : f32
    %5 = vector.broadcast %cst_1 : f32 to vector<16x1xf32>
    %6 = arith.divf %4, %5 : vector<16x1xf32>
    %cst_2 = arith.constant 9.99999997E-7 : f32
    %7 = vector.broadcast %cst_2 : f32 to vector<16x1xf32>
    %8 = arith.addf %6, %7 : vector<16x1xf32>
    %9 = math.rsqrt %8 : vector<16x1xf32>
    %10 = vector.broadcast %9 : vector<16x1xf32> to vector<16x128xf32>
    %11 = arith.mulf %1, %10 : vector<16x128xf32>
    %c0_3 = arith.constant 0 : index
    %c0_4 = arith.constant 0 : index
    %12 = vector.load %arg2[%c0_3, %c0_4] : memref<1x128xf32, #tpu.memory_space<vmem>>, vector<1x128xf32>
    %13 = vector.broadcast %12 : vector<1x128xf32> to vector<16x128xf32>
    %14 = arith.mulf %11, %13 : vector<16x128xf32>
    %15 = arith.truncf %14 : vector<16x128xf32> to vector<16x128xbf16>
    %c0_5 = arith.constant 0 : index
    %c0_6 = arith.constant 0 : index
    %16 = vector.load %arg3[%c0_5, %c0_6] : memref<128x512xbf16, #tpu.memory_space<vmem>>, vector<128x512xbf16>
    %cst_7 = arith.constant dense<0.000000e+00> : vector<16x512xf32>
    %17 = tpu.matmul %15, %16, %cst_7 {dimension_numbers = #tpu.dot_dimension_numbers<[1], [0], [0], [1], [0, 0, 1, 1], [], []>} : vector<16x128xbf16>, vector<128x512xbf16>, vector<16x512xf32> -> vector<16x512xf32>
    %18 = vector.extract_strided_slice %17 {offsets = [0, 0], sizes = [16, 256], strides = [1, 1]} : vector<16x512xf32> to vector<16x256xf32>
    %19 = vector.extract_strided_slice %17 {offsets = [0, 256], sizes = [16, 256], strides = [1, 1]} : vector<16x512xf32> to vector<16x256xf32>
    %20 = arith.negf %18 : vector<16x256xf32>
    %21 = math.exp %20 : vector<16x256xf32>
    %cst_8 = arith.constant 1.000000e+00 : f32
    %22 = vector.broadcast %cst_8 : f32 to vector<16x256xf32>
    %23 = arith.addf %22, %21 : vector<16x256xf32>
    %24 = arith.divf %22, %23 : vector<16x256xf32>
    %25 = arith.mulf %18, %24 : vector<16x256xf32>
    %26 = arith.mulf %25, %19 : vector<16x256xf32>
    %27 = arith.truncf %26 : vector<16x256xf32> to vector<16x256xbf16>
    %c0_9 = arith.constant 0 : index
    %c0_10 = arith.constant 0 : index
    %28 = vector.load %arg4[%c0_9, %c0_10] : memref<256x128xbf16, #tpu.memory_space<vmem>>, vector<256x128xbf16>
    %cst_11 = arith.constant dense<0.000000e+00> : vector<16x128xf32>
    %29 = tpu.matmul %27, %28, %cst_11 {dimension_numbers = #tpu.dot_dimension_numbers<[1], [0], [0], [1], [0, 0, 1, 1], [], []>} : vector<16x256xbf16>, vector<256x128xbf16>, vector<16x128xf32> -> vector<16x128xf32>
    %30 = arith.addf %29, %1 : vector<16x128xf32>
    %31 = arith.truncf %30 : vector<16x128xf32> to vector<16x128xbf16>
    %c0_12 = arith.constant 0 : index
    %c0_13 = arith.constant 0 : index
    %32 = vector.load %arg5[%c0_12, %c0_13] : memref<16x128xbf16, #tpu.memory_space<vmem>>, vector<16x128xbf16>
    tpu.vector_store %arg5[%c0_12, %c0_13], %31 {strides = array<i32>} : memref<16x128xbf16, #tpu.memory_space<vmem>>, vector<16x128xbf16>,
    return
  }
  func.func @transform_0(%arg0: i32) -> (i32, i32) {
    %c0_i32 = arith.constant 0 : i32
    %c0_i32_0 = arith.constant 0 : i32
    return %arg0, %c0_i32 : i32, i32
  }
  func.func @transform_1(%arg0: i32) -> (i32, i32) {
    %c0_i32 = arith.constant 0 : i32
    %c0_i32_0 = arith.constant 0 : i32
    %c0_i32_1 = arith.constant 0 : i32
    return %c0_i32, %c0_i32_0 : i32, i32
  }
  func.func @transform_2(%arg0: i32) -> (i32, i32) {
    %c0_i32 = arith.constant 0 : i32
    %c0_i32_0 = arith.constant 0 : i32
    %c0_i32_1 = arith.constant 0 : i32
    return %c0_i32, %c0_i32_0 : i32, i32
  }
  func.func @transform_3(%arg0: i32) -> (i32, i32) {
    %c0_i32 = arith.constant 0 : i32
    %c0_i32_0 = arith.constant 0 : i32
    %c0_i32_1 = arith.constant 0 : i32
    return %c0_i32, %c0_i32_0 : i32, i32
  }
  func.func @transform_4(%arg0: i32) -> (i32, i32) {
    %c0_i32 = arith.constant 0 : i32
    %c0_i32_0 = arith.constant 0 : i32
    return %arg0, %c0_i32 : i32, i32
  }
}

module attributes {stable_mosaic.version = 11 : i64} {
  func.func @_lm_head_kernel(%arg0: i32, %arg1: memref<2x128xbf16, #tpu.memory_space<vmem>>, %arg2: memref<1x128xf32, #tpu.memory_space<vmem>>, %arg3: memref<128x512xbf16, #tpu.memory_space<vmem>>, %arg4: memref<2x512xf32, #tpu.memory_space<vmem>>) attributes {dimension_semantics = [#tpu.dimension_semantics<parallel>], iteration_bounds = array<i64: 1>, scalar_prefetch = 0 : i64, scratch_operands = 0 : i64, tpu.core_type = #tpu.core_type<tc>, window_params = [{pipeline_mode = #tpu.pipeline_mode<synchronous>, transform_indices = @transform_0, window_bounds = array<i64: 2, 128>}, {pipeline_mode = #tpu.pipeline_mode<synchronous>, transform_indices = @transform_1, window_bounds = array<i64: 1, 128>}, {transform_indices = @transform_2, window_bounds = array<i64: 128, 512>}, {transform_indices = @transform_3, window_bounds = array<i64: 2, 512>}]} {
    %c0 = arith.constant 0 : index
    %c0_0 = arith.constant 0 : index
    %0 = vector.load %arg1[%c0, %c0_0] : memref<2x128xbf16, #tpu.memory_space<vmem>>, vector<2x128xbf16>
    %1 = arith.extf %0 : vector<2x128xbf16> to vector<2x128xf32>
    %2 = arith.mulf %1, %1 : vector<2x128xf32>
    %cst = arith.constant dense<0.000000e+00> : vector<2xf32>
    %3 = vector.multi_reduction <add>, %2, %cst [1] : vector<2x128xf32> to vector<2xf32>
    %4 = vector.shape_cast %3 : vector<2xf32> to vector<2x1xf32>
    %cst_1 = arith.constant 1.280000e+02 : f32
    %5 = vector.broadcast %cst_1 : f32 to vector<2x1xf32>
    %6 = arith.divf %4, %5 : vector<2x1xf32>
    %cst_2 = arith.constant 9.99999997E-7 : f32
    %7 = vector.broadcast %cst_2 : f32 to vector<2x1xf32>
    %8 = arith.addf %6, %7 : vector<2x1xf32>
    %9 = math.rsqrt %8 : vector<2x1xf32>
    %10 = vector.broadcast %9 : vector<2x1xf32> to vector<2x128xf32>
    %11 = arith.mulf %1, %10 : vector<2x128xf32>
    %c0_3 = arith.constant 0 : index
    %c0_4 = arith.constant 0 : index
    %12 = vector.load %arg2[%c0_3, %c0_4] : memref<1x128xf32, #tpu.memory_space<vmem>>, vector<1x128xf32>
    %13 = vector.broadcast %12 : vector<1x128xf32> to vector<2x128xf32>
    %14 = arith.mulf %11, %13 : vector<2x128xf32>
    %15 = arith.truncf %14 : vector<2x128xf32> to vector<2x128xbf16>
    %c0_5 = arith.constant 0 : index
    %c0_6 = arith.constant 0 : index
    %16 = vector.load %arg3[%c0_5, %c0_6] : memref<128x512xbf16, #tpu.memory_space<vmem>>, vector<128x512xbf16>
    %cst_7 = arith.constant dense<0.000000e+00> : vector<2x512xf32>
    %17 = tpu.matmul %15, %16, %cst_7 {dimension_numbers = #tpu.dot_dimension_numbers<[1], [0], [0], [1], [0, 0, 1, 1], [], []>} : vector<2x128xbf16>, vector<128x512xbf16>, vector<2x512xf32> -> vector<2x512xf32>
    %c0_8 = arith.constant 0 : index
    %c0_9 = arith.constant 0 : index
    %18 = vector.load %arg4[%c0_8, %c0_9] : memref<2x512xf32, #tpu.memory_space<vmem>>, vector<2x512xf32>
    tpu.vector_store %arg4[%c0_8, %c0_9], %17 {strides = array<i32>} : memref<2x512xf32, #tpu.memory_space<vmem>>, vector<2x512xf32>,
    return
  }
  func.func @transform_0(%arg0: i32) -> (i32, i32) {
    %c0_i32 = arith.constant 0 : i32
    %c0_i32_0 = arith.constant 0 : i32
    %c0_i32_1 = arith.constant 0 : i32
    return %c0_i32, %c0_i32_0 : i32, i32
  }
  func.func @transform_1(%arg0: i32) -> (i32, i32) {
    %c0_i32 = arith.constant 0 : i32
    %c0_i32_0 = arith.constant 0 : i32
    %c0_i32_1 = arith.constant 0 : i32
    return %c0_i32, %c0_i32_0 : i32, i32
  }
  func.func @transform_2(%arg0: i32) -> (i32, i32) {
    %c0_i32 = arith.constant 0 : i32
    %c0_i32_0 = arith.constant 0 : i32
    return %c0_i32, %arg0 : i32, i32
  }
  func.func @transform_3(%arg0: i32) -> (i32, i32) {
    %c0_i32 = arith.constant 0 : i32
    %c0_i32_0 = arith.constant 0 : i32
    return %c0_i32, %arg0 : i32, i32
  }
}

module attributes {stable_mosaic.version = 11 : i64} {
  func.func @_mlp_kernel(%arg0: i32, %arg1: memref<2x128xbf16, #tpu.memory_space<vmem>>, %arg2: memref<1x128xf32, #tpu.memory_space<vmem>>, %arg3: memref<128x512xbf16, #tpu.memory_space<vmem>>, %arg4: memref<256x128xbf16, #tpu.memory_space<vmem>>, %arg5: memref<2x128xbf16, #tpu.memory_space<vmem>>) attributes {dimension_semantics = [#tpu.dimension_semantics<parallel>], iteration_bounds = array<i64: 1>, scalar_prefetch = 0 : i64, scratch_operands = 0 : i64, tpu.core_type = #tpu.core_type<tc>, window_params = [{transform_indices = @transform_0, window_bounds = array<i64: 2, 128>}, {pipeline_mode = #tpu.pipeline_mode<synchronous>, transform_indices = @transform_1, window_bounds = array<i64: 1, 128>}, {pipeline_mode = #tpu.pipeline_mode<synchronous>, transform_indices = @transform_2, window_bounds = array<i64: 128, 512>}, {pipeline_mode = #tpu.pipeline_mode<synchronous>, transform_indices = @transform_3, window_bounds = array<i64: 256, 128>}, {transform_indices = @transform_4, window_bounds = array<i64: 2, 128>}]} {
    %c0 = arith.constant 0 : index
    %c0_0 = arith.constant 0 : index
    %0 = vector.load %arg1[%c0, %c0_0] : memref<2x128xbf16, #tpu.memory_space<vmem>>, vector<2x128xbf16>
    %1 = arith.extf %0 : vector<2x128xbf16> to vector<2x128xf32>
    %2 = arith.mulf %1, %1 : vector<2x128xf32>
    %cst = arith.constant dense<0.000000e+00> : vector<2xf32>
    %3 = vector.multi_reduction <add>, %2, %cst [1] : vector<2x128xf32> to vector<2xf32>
    %4 = vector.shape_cast %3 : vector<2xf32> to vector<2x1xf32>
    %cst_1 = arith.constant 1.280000e+02 : f32
    %5 = vector.broadcast %cst_1 : f32 to vector<2x1xf32>
    %6 = arith.divf %4, %5 : vector<2x1xf32>
    %cst_2 = arith.constant 9.99999997E-7 : f32
    %7 = vector.broadcast %cst_2 : f32 to vector<2x1xf32>
    %8 = arith.addf %6, %7 : vector<2x1xf32>
    %9 = math.rsqrt %8 : vector<2x1xf32>
    %10 = vector.broadcast %9 : vector<2x1xf32> to vector<2x128xf32>
    %11 = arith.mulf %1, %10 : vector<2x128xf32>
    %c0_3 = arith.constant 0 : index
    %c0_4 = arith.constant 0 : index
    %12 = vector.load %arg2[%c0_3, %c0_4] : memref<1x128xf32, #tpu.memory_space<vmem>>, vector<1x128xf32>
    %13 = vector.broadcast %12 : vector<1x128xf32> to vector<2x128xf32>
    %14 = arith.mulf %11, %13 : vector<2x128xf32>
    %15 = arith.truncf %14 : vector<2x128xf32> to vector<2x128xbf16>
    %c0_5 = arith.constant 0 : index
    %c0_6 = arith.constant 0 : index
    %16 = vector.load %arg3[%c0_5, %c0_6] : memref<128x512xbf16, #tpu.memory_space<vmem>>, vector<128x512xbf16>
    %cst_7 = arith.constant dense<0.000000e+00> : vector<2x512xf32>
    %17 = tpu.matmul %15, %16, %cst_7 {dimension_numbers = #tpu.dot_dimension_numbers<[1], [0], [0], [1], [0, 0, 1, 1], [], []>} : vector<2x128xbf16>, vector<128x512xbf16>, vector<2x512xf32> -> vector<2x512xf32>
    %18 = vector.extract_strided_slice %17 {offsets = [0, 0], sizes = [2, 256], strides = [1, 1]} : vector<2x512xf32> to vector<2x256xf32>
    %19 = vector.extract_strided_slice %17 {offsets = [0, 256], sizes = [2, 256], strides = [1, 1]} : vector<2x512xf32> to vector<2x256xf32>
    %20 = arith.negf %18 : vector<2x256xf32>
    %21 = math.exp %20 : vector<2x256xf32>
    %cst_8 = arith.constant 1.000000e+00 : f32
    %22 = vector.broadcast %cst_8 : f32 to vector<2x256xf32>
    %23 = arith.addf %22, %21 : vector<2x256xf32>
    %24 = arith.divf %22, %23 : vector<2x256xf32>
    %25 = arith.mulf %18, %24 : vector<2x256xf32>
    %26 = arith.mulf %25, %19 : vector<2x256xf32>
    %27 = arith.truncf %26 : vector<2x256xf32> to vector<2x256xbf16>
    %c0_9 = arith.constant 0 : index
    %c0_10 = arith.constant 0 : index
    %28 = vector.load %arg4[%c0_9, %c0_10] : memref<256x128xbf16, #tpu.memory_space<vmem>>, vector<256x128xbf16>
    %cst_11 = arith.constant dense<0.000000e+00> : vector<2x128xf32>
    %29 = tpu.matmul %27, %28, %cst_11 {dimension_numbers = #tpu.dot_dimension_numbers<[1], [0], [0], [1], [0, 0, 1, 1], [], []>} : vector<2x256xbf16>, vector<256x128xbf16>, vector<2x128xf32> -> vector<2x128xf32>
    %30 = arith.truncf %29 : vector<2x128xf32> to vector<2x128xbf16>
    %c0_12 = arith.constant 0 : index
    %c0_13 = arith.constant 0 : index
    %31 = vector.load %arg5[%c0_12, %c0_13] : memref<2x128xbf16, #tpu.memory_space<vmem>>, vector<2x128xbf16>
    tpu.vector_store %arg5[%c0_12, %c0_13], %30 {strides = array<i32>} : memref<2x128xbf16, #tpu.memory_space<vmem>>, vector<2x128xbf16>,
    return
  }
  func.func @transform_0(%arg0: i32) -> (i32, i32) {
    %c0_i32 = arith.constant 0 : i32
    %c0_i32_0 = arith.constant 0 : i32
    return %arg0, %c0_i32 : i32, i32
  }
  func.func @transform_1(%arg0: i32) -> (i32, i32) {
    %c0_i32 = arith.constant 0 : i32
    %c0_i32_0 = arith.constant 0 : i32
    %c0_i32_1 = arith.constant 0 : i32
    return %c0_i32, %c0_i32_0 : i32, i32
  }
  func.func @transform_2(%arg0: i32) -> (i32, i32) {
    %c0_i32 = arith.constant 0 : i32
    %c0_i32_0 = arith.constant 0 : i32
    %c0_i32_1 = arith.constant 0 : i32
    return %c0_i32, %c0_i32_0 : i32, i32
  }
  func.func @transform_3(%arg0: i32) -> (i32, i32) {
    %c0_i32 = arith.constant 0 : i32
    %c0_i32_0 = arith.constant 0 : i32
    %c0_i32_1 = arith.constant 0 : i32
    return %c0_i32, %c0_i32_0 : i32, i32
  }
  func.func @transform_4(%arg0: i32) -> (i32, i32) {
    %c0_i32 = arith.constant 0 : i32
    %c0_i32_0 = arith.constant 0 : i32
    return %arg0, %c0_i32 : i32, i32
  }
}

</mosaic_0001>

<bundles_post_ra>
// kernel: minisequence_inference_forward.5
= control target key start
LH: loop header
LB: loop body
LE: loop exit
PB: predicated region body
PF: predicated region fallthrough
CT: control target
= control target key end

     0   :  { %vm18_vm0 = vcmask 1041408   ;;  %v422_v30 = vmov 0   ;;  %v423_v45 = vmov 1983009808   ;;  %v319_v47 = vlaneseq  ;;  %s554_s0 = inlined_call_operand.vmem [shape: bf16[2,128], index: 0, kind: input, shape index: {}]   ;;  %s555_s2 = inlined_call_operand.vmem [shape: bf16[128,512], index: 2, kind: input, shape index: {}]   ;;  %s556_s1 = inlined_call_operand.vmem [shape: f32[1,128], index: 1, kind: input, shape index: {}]   ;;  %s557_s3 = inlined_call_operand.vmem [shape: f32[2,512], index: 3, kind: output, shape index: {}]  }
   0x1   :  { %v15_v0 = vld [vmem:[%s554_s0] sm:$0x1]  ;;  %v372_v2 = vld [vmem:[%s555_s2 + $0xe4] ss:$16 sps:$4 sm:$0xff]   ;;  %v374_v3 = vld [vmem:[%s555_s2 + $0xec] ss:$16 sps:$4 sm:$0xff]   ;;  %260 = vmatprep.mubr.bf16.mxu0 %v422_v30  ;;  %301 = vmatprep.mubr.bf16.mxu1 %v422_v30  ;;  %v317_v46 = vunpack.c.l.s4 %v423_v45 }
   0x2   :  { %v447_v1 = vunpack.c.l.bf16 %v15_v0  ;;  %v376_v4 = vld [vmem:[%s555_s2 + $0xe0] ss:$16 sps:$4 sm:$0xff]   ;;  %v377_v5 = vld [vmem:[%s555_s2 + $0xe8] ss:$16 sps:$4 sm:$0xff]   ;;  %228 = vmatprep.subr.bf16.mxu0 %v372_v2  ;;  %v378_v7 = vld [vmem:[%s555_s2 + $0xc4] ss:$16 sps:$4 sm:$0xff]   ;;  %269 = vmatprep.subr.bf16.mxu1 %v374_v3 }
   0x3   :  { %229 = vmatpush1.bf16.msra.mxu0 %v376_v4  ;;  %v380_v8 = vld [vmem:[%s555_s2 + $0xcc] ss:$16 sps:$4 sm:$0xff]   ;;  %270 = vmatpush1.bf16.msra.mxu1 %v377_v5  ;;  %v382_v10 = vld [vmem:[%s555_s2 + $0xc0] ss:$16 sps:$4 sm:$0xff]   ;;  %v383_v11 = vld [vmem:[%s555_s2 + $0xc8] ss:$16 sps:$4 sm:$0xff]   ;;  %v318_v48 = vunpack.c.0.s8 %v317_v46 }
   0x4   :  { %v17_v6 = vmul.f32 %v447_v1, %v447_v1  ;;  %230 = vmatprep.subr.bf16.mxu0 %v378_v7  ;;  %271 = vmatprep.subr.bf16.mxu1 %v380_v8  ;;  %v384_v12 = vld [vmem:[%s555_s2 + $0xa4] ss:$16 sps:$4 sm:$0xff]   ;;  %v386_v13 = vld [vmem:[%s555_s2 + $0xac] ss:$16 sps:$4 sm:$0xff]   ;;  %v388_v14 = vld [vmem:[%s555_s2 + $0xa0] ss:$16 sps:$4 sm:$0xff]  }
   0x5   :  { %v389_v15 = vld [vmem:[%s555_s2 + $0xa8] ss:$16 sps:$4 sm:$0xff]   ;;  %v390_v16 = vld [vmem:[%s555_s2 + $0x84] ss:$16 sps:$4 sm:$0xff]   ;;  %v392_v17 = vld [vmem:[%s555_s2 + $0x8c] ss:$16 sps:$4 sm:$0xff]  }
   0x6   :  { %v19_v9 = vsel %vm18_vm0, %v17_v6, 0.0  ;;  %v394_v18 = vld [vmem:[%s555_s2 + $0x80] ss:$16 sps:$4 sm:$0xff]   ;;  %v395_v19 = vld [vmem:[%s555_s2 + $0x88] ss:$16 sps:$4 sm:$0xff]   ;;  %v320_v49 = vshrl.u32 %v319_v47, 7 }
   0x7   :  { %20 = vadd.xlane.f32.xlu0 %v19_v9  ;;  %231 = vmatpush1.bf16.msra.mxu0 %v382_v10  ;;  %v396_v20 = vld [vmem:[%s555_s2 + $0x64] ss:$16 sps:$4 sm:$0xff]   ;;  %v398_v21 = vld [vmem:[%s555_s2 + $0x6c] ss:$16 sps:$4 sm:$0xff]   ;;  %v400_v22 = vld [vmem:[%s555_s2 + $0x60] ss:$16 sps:$4 sm:$0xff]  }
   0x8   :  { %272 = vmatpush1.bf16.msra.mxu1 %v383_v11  ;;  %232 = vmatprep.subr.bf16.mxu0 %v384_v12  ;;  %v401_v23 = vld [vmem:[%s555_s2 + $0x68] ss:$16 sps:$4 sm:$0xff]   ;;  %v402_v24 = vld [vmem:[%s555_s2 + $0x44] ss:$16 sps:$4 sm:$0xff]   ;;  %v404_v25 = vld [vmem:[%s555_s2 + $0x4c] ss:$16 sps:$4 sm:$0xff]   ;;  %v321_v52 = vsub.s32 %v318_v48, %v320_v49 }
   0x9   :  { %273 = vmatprep.subr.bf16.mxu1 %v386_v13  ;;  %v406_v26 = vld [vmem:[%s555_s2 + $0x40] ss:$16 sps:$4 sm:$0xff]   ;;  %v407_v27 = vld [vmem:[%s555_s2 + $0x48] ss:$16 sps:$4 sm:$0xff]   ;;  %v408_v28 = vld [vmem:[%s555_s2 + $0x24] ss:$16 sps:$4 sm:$0xff]  }
   0xa   :  { %v410_v29 = vld [vmem:[%s555_s2 + $0x2c] ss:$16 sps:$4 sm:$0xff]   ;;  %v412_v31 = vld [vmem:[%s555_s2 + $0x20] ss:$16 sps:$4 sm:$0xff]   ;;  %v413_v32 = vld [vmem:[%s555_s2 + $0x28] ss:$16 sps:$4 sm:$0xff]  }
   0xb   :  { %233 = vmatpush1.bf16.msra.mxu0 %v388_v14  ;;  %v414_v33 = vld [vmem:[%s555_s2 + $0x4] ss:$16 sps:$4 sm:$0xff]   ;;  %v416_v34 = vld [vmem:[%s555_s2 + $0xc] ss:$16 sps:$4 sm:$0xff]   ;;  %v418_v35 = vld [vmem:[%s555_s2] ss:$16 sps:$4 sm:$0xff]  }
   0xc   :  { %274 = vmatpush1.bf16.msra.mxu1 %v389_v15  ;;  %234 = vmatprep.subr.bf16.mxu0 %v390_v16  ;;  %v419_v36 = vld [vmem:[%s555_s2 + $0x8] ss:$16 sps:$4 sm:$0xff]   ;;  %v337_v41 = vld [vmem:[%s556_s1] ss:$0 sm:$0xff] }
   0xd   :  { %275 = vmatprep.subr.bf16.mxu1 %v392_v17 }
   0xf   :  { %235 = vmatpush1.bf16.msra.mxu0 %v394_v18 }
  0x10   :  { %276 = vmatpush1.bf16.msra.mxu1 %v395_v19  ;;  %236 = vmatprep.subr.bf16.mxu0 %v396_v20 }
  0x11   :  { %277 = vmatprep.subr.bf16.mxu1 %v398_v21 }
  0x13   :  { %237 = vmatpush1.bf16.msra.mxu0 %v400_v22 }
  0x14   :  { %278 = vmatpush1.bf16.msra.mxu1 %v401_v23  ;;  %238 = vmatprep.subr.bf16.mxu0 %v402_v24 }
  0x15   :  { %279 = vmatprep.subr.bf16.mxu1 %v404_v25 }
  0x17   :  { %239 = vmatpush1.bf16.msra.mxu0 %v406_v26 }
  0x18   :  { %280 = vmatpush1.bf16.msra.mxu1 %v407_v27  ;;  %240 = vmatprep.subr.bf16.mxu0 %v408_v28 }
  0x19   :  { %281 = vmatprep.subr.bf16.mxu1 %v410_v29 }
  0x1b   :  { %241 = vmatpush1.bf16.msra.mxu0 %v412_v31 }
  0x1c   :  { %282 = vmatpush1.bf16.msra.mxu1 %v413_v32  ;;  %242 = vmatprep.subr.bf16.mxu0 %v414_v33 }
  0x1d   :  { %283 = vmatprep.subr.bf16.mxu1 %v416_v34 }
  0x1f   :  { %243 = vmatpush1.bf16.msra.mxu0 %v418_v35 }
  0x20   :  { %284 = vmatpush1.bf16.msra.mxu1 %v419_v36 }
  0x90   :  { %v21_v37 = vpop.xlane.xlu0 %20 }
  0x91   :  { %v23_v38 = vmul.f32 0.0078125, %v21_v37 }
  0x93   :  { %v24_v39 = vadd.f32 1e-06, %v23_v38 }
  0x95   :  { %420 = vrsqrt.f32 %v24_v39 }
  0xa2   :  { %v421_v40 = vpop.eup %420 }
  0xa3   :  { %v26_v42 = vmul.f32 %v421_v40, %v447_v1 }
  0xa5   :  { %v34_v43 = vmul.f32 %v337_v41, %v26_v42 }
  0xa7   :  { %v35_v44 = vpack.c.bf16 %v34_v43, %v34_v43 }
  0xa9   :  { %261 = vmatmul.mubr.bf16.vlgmr.msra.gmra.mxu0 %v35_v44  ;;  %302 = vmatmul.mubr.bf16.vlgmr.msra.gmra.mxu1 %v35_v44 }
 0x169   :  { %v262_v50 = vpop.f32.mrf.mxu0  ;;  %v303_v51 = vpop.f32.mrf.mxu1 }
 0x16b   :  { %v264_v53 = vpop.f32.mrf.mxu0  ;;  %v305_v54 = vpop.f32.mrf.mxu1 }
 0x16c   :  { %v314_v55 = vcombine.low %v262_v50, %v264_v53  ;;  %v315_v56 = vcombine.low %v303_v51, %v305_v54 }
 0x16d   :  { %v266_v57 = vpop.f32.mrf.mxu0  ;;  %v307_v58 = vpop.f32.mrf.mxu1 }
 0x16e   :  { %v322_v59 = vrot.slane %v314_v55, %v321_v52  ;;  %v329_v60 = vrot.slane %v315_v56, %v321_v52 }
 0x16f   :  { %v267_v61 = vpop.f32.mrf.mxu0  ;;  %v308_v62 = vpop.f32.mrf.mxu1 }
 0x170   :  { %v330_v63 = vcombine.low %v322_v59, %v329_v60 }
 0x172   :  { %332 = vst [vmem:[%s557_s3] sm:$0xff] %v330_v63 }

// kernel: minisequence_inference_forward.4
= control target key start
LH: loop header
LB: loop body
LE: loop exit
PB: predicated region body
PF: predicated region fallthrough
CT: control target
= control target key end

     0   :  { %vm21_vm0 = vcmask 1041408   ;;  %v653_v30 = vmov 0   ;;  %s837_s0 = inlined_call_operand.vmem [shape: bf16[2,128], index: 0, kind: input, shape index: {}]   ;;  %s838_s2 = inlined_call_operand.vmem [shape: bf16[128,512], index: 2, kind: input, shape index: {}]   ;;  %s839_s1 = inlined_call_operand.vmem [shape: f32[1,128], index: 1, kind: input, shape index: {}]   ;;  %s840_s3 = inlined_call_operand.vmem [shape: bf16[256,128], index: 3, kind: input, shape index: {}]   ;;  %s841_s4 = inlined_call_operand.vmem [shape: bf16[2,128], index: 4, kind: output, shape index: {}]  }
   0x1   :  { %v18_v0 = vld [vmem:[%s837_s0] sm:$0x1]  ;;  %v579_v2 = vld [vmem:[%s838_s2 + $0xe4] ss:$16 sps:$4 sm:$0xff]   ;;  %v581_v3 = vld [vmem:[%s838_s2 + $0xec] ss:$16 sps:$4 sm:$0xff]   ;;  %263 = vmatprep.mubr.bf16.mxu0 %v653_v30  ;;  %304 = vmatprep.mubr.bf16.mxu1 %v653_v30 }
   0x2   :  { %v682_v1 = vunpack.c.l.bf16 %v18_v0  ;;  %v583_v4 = vld [vmem:[%s838_s2 + $0xe0] ss:$16 sps:$4 sm:$0xff]   ;;  %v584_v5 = vld [vmem:[%s838_s2 + $0xe8] ss:$16 sps:$4 sm:$0xff]   ;;  %231 = vmatprep.subr.bf16.mxu0 %v579_v2  ;;  %v585_v7 = vld [vmem:[%s838_s2 + $0xc4] ss:$16 sps:$4 sm:$0xff]   ;;  %272 = vmatprep.subr.bf16.mxu1 %v581_v3 }
   0x3   :  { %232 = vmatpush1.bf16.msra.mxu0 %v583_v4  ;;  %v587_v8 = vld [vmem:[%s838_s2 + $0xcc] ss:$16 sps:$4 sm:$0xff]   ;;  %273 = vmatpush1.bf16.msra.mxu1 %v584_v5  ;;  %v589_v10 = vld [vmem:[%s838_s2 + $0xc0] ss:$16 sps:$4 sm:$0xff]   ;;  %v590_v11 = vld [vmem:[%s838_s2 + $0xc8] ss:$16 sps:$4 sm:$0xff]  }
   0x4   :  { %v20_v6 = vmul.f32 %v682_v1, %v682_v1  ;;  %233 = vmatprep.subr.bf16.mxu0 %v585_v7  ;;  %274 = vmatprep.subr.bf16.mxu1 %v587_v8  ;;  %v591_v12 = vld [vmem:[%s838_s2 + $0xa4] ss:$16 sps:$4 sm:$0xff]   ;;  %v593_v13 = vld [vmem:[%s838_s2 + $0xac] ss:$16 sps:$4 sm:$0xff]   ;;  %v595_v14 = vld [vmem:[%s838_s2 + $0xa0] ss:$16 sps:$4 sm:$0xff]  }
   0x5   :  { %v596_v15 = vld [vmem:[%s838_s2 + $0xa8] ss:$16 sps:$4 sm:$0xff]   ;;  %v597_v16 = vld [vmem:[%s838_s2 + $0x84] ss:$16 sps:$4 sm:$0xff]   ;;  %v599_v17 = vld [vmem:[%s838_s2 + $0x8c] ss:$16 sps:$4 sm:$0xff]  }
   0x6   :  { %v22_v9 = vsel %vm21_vm0, %v20_v6, 0.0  ;;  %v601_v18 = vld [vmem:[%s838_s2 + $0x80] ss:$16 sps:$4 sm:$0xff]   ;;  %v602_v19 = vld [vmem:[%s838_s2 + $0x88] ss:$16 sps:$4 sm:$0xff]  }
   0x7   :  { %23 = vadd.xlane.f32.xlu0 %v22_v9  ;;  %234 = vmatpush1.bf16.msra.mxu0 %v589_v10  ;;  %v603_v20 = vld [vmem:[%s838_s2 + $0x64] ss:$16 sps:$4 sm:$0xff]   ;;  %v605_v21 = vld [vmem:[%s838_s2 + $0x6c] ss:$16 sps:$4 sm:$0xff]   ;;  %v607_v22 = vld [vmem:[%s838_s2 + $0x60] ss:$16 sps:$4 sm:$0xff]  }
   0x8   :  { %275 = vmatpush1.bf16.msra.mxu1 %v590_v11  ;;  %235 = vmatprep.subr.bf16.mxu0 %v591_v12  ;;  %v608_v23 = vld [vmem:[%s838_s2 + $0x68] ss:$16 sps:$4 sm:$0xff]   ;;  %v609_v24 = vld [vmem:[%s838_s2 + $0x44] ss:$16 sps:$4 sm:$0xff]   ;;  %v611_v25 = vld [vmem:[%s838_s2 + $0x4c] ss:$16 sps:$4 sm:$0xff]  }
   0x9   :  { %276 = vmatprep.subr.bf16.mxu1 %v593_v13  ;;  %v613_v26 = vld [vmem:[%s838_s2 + $0x40] ss:$16 sps:$4 sm:$0xff]   ;;  %v614_v27 = vld [vmem:[%s838_s2 + $0x48] ss:$16 sps:$4 sm:$0xff]   ;;  %v615_v28 = vld [vmem:[%s838_s2 + $0x24] ss:$16 sps:$4 sm:$0xff]  }
   0xa   :  { %v617_v29 = vld [vmem:[%s838_s2 + $0x2c] ss:$16 sps:$4 sm:$0xff]   ;;  %v619_v31 = vld [vmem:[%s838_s2 + $0x20] ss:$16 sps:$4 sm:$0xff]   ;;  %v620_v32 = vld [vmem:[%s838_s2 + $0x28] ss:$16 sps:$4 sm:$0xff]  }
   0xb   :  { %236 = vmatpush1.bf16.msra.mxu0 %v595_v14  ;;  %v621_v33 = vld [vmem:[%s838_s2 + $0x4] ss:$16 sps:$4 sm:$0xff]   ;;  %v623_v34 = vld [vmem:[%s838_s2 + $0xc] ss:$16 sps:$4 sm:$0xff]   ;;  %v625_v35 = vld [vmem:[%s838_s2] ss:$16 sps:$4 sm:$0xff]  }
   0xc   :  { %277 = vmatpush1.bf16.msra.mxu1 %v596_v15  ;;  %237 = vmatprep.subr.bf16.mxu0 %v597_v16  ;;  %v626_v36 = vld [vmem:[%s838_s2 + $0x8] ss:$16 sps:$4 sm:$0xff]   ;;  %v505_v41 = vld [vmem:[%s839_s1] ss:$0 sm:$0xff]  ;;  %v629_v47 = vld [vmem:[%s840_s3 + $0x70] sm:$0xff]  }
   0xd   :  { %278 = vmatprep.subr.bf16.mxu1 %v599_v17  ;;  %v627_v45 = vld [vmem:[%s840_s3 + $0x78] sm:$0xff]   ;;  %v630_v48 = vld [vmem:[%s840_s3 + $0x30] sm:$0xff]   ;;  %v631_v49 = vld [vmem:[%s840_s3 + $0x68] sm:$0xff]  }
   0xe   :  { %v628_v46 = vld [vmem:[%s840_s3 + $0x38] sm:$0xff]   ;;  %v632_v50 = vld [vmem:[%s840_s3 + $0x28] sm:$0xff]   ;;  %v633_v51 = vld [vmem:[%s840_s3 + $0x60] sm:$0xff]  }
   0xf   :  { %238 = vmatpush1.bf16.msra.mxu0 %v601_v18  ;;  %v634_v52 = vld [vmem:[%s840_s3 + $0x20] sm:$0xff]   ;;  %v635_v53 = vld [vmem:[%s840_s3 + $0x58] sm:$0xff]   ;;  %v637_v55 = vld [vmem:[%s840_s3 + $0x50] sm:$0xff]  }
  0x10   :  { %279 = vmatpush1.bf16.msra.mxu1 %v602_v19  ;;  %239 = vmatprep.subr.bf16.mxu0 %v603_v20  ;;  %v636_v54 = vld [vmem:[%s840_s3 + $0x18] sm:$0xff]   ;;  %v638_v56 = vld [vmem:[%s840_s3 + $0x10] sm:$0xff]   ;;  %v639_v57 = vld [vmem:[%s840_s3 + $0x48] sm:$0xff]  }
  0x11   :  { %280 = vmatprep.subr.bf16.mxu1 %v605_v21  ;;  %v640_v58 = vld [vmem:[%s840_s3 + $0x8] sm:$0xff]   ;;  %v641_v59 = vld [vmem:[%s840_s3 + $0x40] sm:$0xff]  }
  0x12   :  { %v642_v60 = vld [vmem:[%s840_s3] sm:$0xff]  }
  0x13   :  { %240 = vmatpush1.bf16.msra.mxu0 %v607_v22 }
  0x14   :  { %281 = vmatpush1.bf16.msra.mxu1 %v608_v23  ;;  %241 = vmatprep.subr.bf16.mxu0 %v609_v24 }
  0x15   :  { %282 = vmatprep.subr.bf16.mxu1 %v611_v25 }
  0x17   :  { %242 = vmatpush1.bf16.msra.mxu0 %v613_v26 }
  0x18   :  { %283 = vmatpush1.bf16.msra.mxu1 %v614_v27  ;;  %243 = vmatprep.subr.bf16.mxu0 %v615_v28 }
  0x19   :  { %284 = vmatprep.subr.bf16.mxu1 %v617_v29 }
  0x1b   :  { %244 = vmatpush1.bf16.msra.mxu0 %v619_v31 }
  0x1c   :  { %285 = vmatpush1.bf16.msra.mxu1 %v620_v32  ;;  %245 = vmatprep.subr.bf16.mxu0 %v621_v33 }
  0x1d   :  { %286 = vmatprep.subr.bf16.mxu1 %v623_v34 }
  0x1f   :  { %246 = vmatpush1.bf16.msra.mxu0 %v625_v35 }
  0x20   :  { %287 = vmatpush1.bf16.msra.mxu1 %v626_v36  ;;  %556 = vmatprep.subr.bf16.mxu0 %v627_v45 }
  0x90   :  { %v24_v37 = vpop.xlane.xlu0 %23 }
  0x91   :  { %v26_v38 = vmul.f32 0.0078125, %v24_v37 }
  0x93   :  { %v27_v39 = vadd.f32 1e-06, %v26_v38 }
  0x95   :  { %643 = vrsqrt.f32 %v27_v39 }
  0xa2   :  { %v644_v40 = vpop.eup %643 }
  0xa3   :  { %v29_v42 = vmul.f32 %v644_v40, %v682_v1 }
  0xa5   :  { %v37_v43 = vmul.f32 %v505_v41, %v29_v42 }
  0xa7   :  { %v38_v44 = vpack.c.bf16 %v37_v43, %v37_v43 }
  0xa9   :  { %264 = vmatmul.mubr.bf16.vlgmr.msra.gmra.mxu0 %v38_v44  ;;  %305 = vmatmul.mubr.bf16.vlgmr.msra.gmra.mxu1 %v38_v44 }
  0xaa   :  { %557 = vmatpush3.bf16.msra.mxu0 %v628_v46 }
  0xab   :  { %558 = vmatprep.subr.bf16.mxu0 %v629_v47 }
  0xae   :  { %559 = vmatpush3.bf16.msra.mxu0 %v630_v48 }
  0xaf   :  { %560 = vmatprep.subr.bf16.mxu0 %v631_v49 }
  0xb2   :  { %561 = vmatpush3.bf16.msra.mxu0 %v632_v50 }
  0xb3   :  { %562 = vmatprep.subr.bf16.mxu0 %v633_v51 }
  0xb6   :  { %563 = vmatpush3.bf16.msra.mxu0 %v634_v52 }
  0xb7   :  { %564 = vmatprep.subr.bf16.mxu0 %v635_v53 }
  0xba   :  { %565 = vmatpush3.bf16.msra.mxu0 %v636_v54 }
  0xbb   :  { %566 = vmatprep.subr.bf16.mxu0 %v637_v55 }
  0xbe   :  { %567 = vmatpush3.bf16.msra.mxu0 %v638_v56 }
  0xbf   :  { %568 = vmatprep.subr.bf16.mxu0 %v639_v57 }
  0xc2   :  { %569 = vmatpush3.bf16.msra.mxu0 %v640_v58 }
  0xc3   :  { %570 = vmatprep.subr.bf16.mxu0 %v641_v59 }
  0xc6   :  { %571 = vmatpush3.bf16.msra.mxu0 %v642_v60 }
 0x169   :  { %v265_v61 = vpop.f32.mrf.mxu0  ;;  %v306_v62 = vpop.f32.mrf.mxu1 }
 0x16a   :  { %v538_v63 = vmul.f32 -1.442695, %v265_v61 }
 0x16b   :  { %v267_v0 = vpop.f32.mrf.mxu0  ;;  %v308_v1 = vpop.f32.mrf.mxu1 }
 0x16c   :  { %645 = vpow2.f32 %v538_v63  ;;  %v539_v2 = vmul.f32 -1.442695, %v267_v0 }
 0x16d   :  { %v269_v3 = vpop.f32.mrf.mxu0  ;;  %v310_v4 = vpop.f32.mrf.mxu1 }
 0x16e   :  { %647 = vpow2.f32 %v539_v2 }
 0x16f   :  { %v270_v5 = vpop.f32.mrf.mxu0  ;;  %v311_v6 = vpop.f32.mrf.mxu1 }
 0x179   :  { %v646_v7 = vpop.eup %645 }
 0x17a   :  { %v319_v8 = vadd.f32 1.0, %v646_v7 }
 0x17b   :  { %v648_v9 = vpop.eup %647 }
 0x17c   :  { %649 = vrcp.f32 %v319_v8  ;;  %v320_v10 = vadd.f32 1.0, %v648_v9 }
 0x17e   :  { %651 = vrcp.f32 %v320_v10 }
 0x189   :  { %v650_v11 = vpop.eup %649 }
 0x18a   :  { %v325_v12 = vmul.f32 %v650_v11, %v265_v61 }
 0x18b   :  { %v652_v13 = vpop.eup %651 }
 0x18c   :  { %v326_v14 = vmul.f32 %v652_v13, %v267_v0  ;;  %v327_v15 = vmul.f32 %v325_v12, %v306_v62 }
 0x18e   :  { %v328_v16 = vmul.f32 %v326_v14, %v308_v1  ;;  %v329_v18 = vpack.c.bf16 %v327_v15, %v327_v15 }
 0x190   :  { %v330_v17 = vpack.c.bf16 %v328_v16, %v328_v16 }
 0x192   :  { %491 = vmatprep.mubr.bf16.mxu0 %v330_v17 }
 0x193   :  { %492 = vmatmul.mubr.bf16.vlgmr.msra.gmra.mxu0 %v329_v18 }
 0x253   :  { %v572_v19 = vpop.f32.mrf.mxu0 }
 0x255   :  { %v573_v20 = vpop.f32.mrf.mxu0 }
 0x256   :  { %v574_v21 = vadd.f32 %v573_v20, %v572_v19 }
 0x257   :  { %v575_v22 = vpop.f32.mrf.mxu0 }
 0x258   :  { %v499_v23 = vpack.c.bf16 %v574_v21, %v574_v21 }
 0x259   :  { %v576_v24 = vpop.f32.mrf.mxu0 }
 0x25a   :  { %500 = vst [vmem:[%s841_s4] sm:$0x1] %v499_v23 }

// kernel: minisequence_inference_forward.3
= control target key start
LH: loop header
LB: loop body
LE: loop exit
PB: predicated region body
PF: predicated region fallthrough
CT: control target
= control target key end

     0   :  { %v715_v31 = vmov 0   ;;  %s906_s0 = inlined_call_operand.vmem [shape: bf16[16,128], index: 0, kind: input, shape index: {}]   ;;  %s907_s2 = inlined_call_operand.vmem [shape: bf16[128,512], index: 2, kind: input, shape index: {}]   ;;  %s908_s1 = inlined_call_operand.vmem [shape: f32[1,128], index: 1, kind: input, shape index: {}]   ;;  %s909_s3 = inlined_call_operand.vmem [shape: bf16[256,128], index: 3, kind: input, shape index: {}]   ;;  %s910_s4 = inlined_call_operand.vmem [shape: bf16[16,128], index: 4, kind: output, shape index: {}]  }
   0x1   :  { %v600_v0 = vld [vmem:[%s906_s0] sm:$0xff]   ;;  %v633_v4 = vld [vmem:[%s907_s2 + $0xec] ss:$16 sps:$4 sm:$0xff]   ;;  %v636_v6 = vld [vmem:[%s907_s2 + $0xe8] ss:$16 sps:$4 sm:$0xff]   ;;  %271 = vmatprep.mubr.bf16.mxu0 %v715_v31  ;;  %314 = vmatprep.mubr.bf16.mxu1 %v715_v31 }
   0x2   :  { %v744_v1 = vunpack.c.l.bf16 %v600_v0  ;;  %v746_v2 = vunpack.c.h.bf16 %v600_v0  ;;  %v631_v3 = vld [vmem:[%s907_s2 + $0xe4] ss:$16 sps:$4 sm:$0xff]   ;;  %v635_v5 = vld [vmem:[%s907_s2 + $0xe0] ss:$16 sps:$4 sm:$0xff]   ;;  %282 = vmatprep.subr.bf16.mxu1 %v633_v4  ;;  %v639_v10 = vld [vmem:[%s907_s2 + $0xcc] ss:$16 sps:$4 sm:$0xff]  }
   0x3   :  { %239 = vmatprep.subr.bf16.mxu0 %v631_v3  ;;  %283 = vmatpush1.bf16.msra.mxu1 %v636_v6  ;;  %v637_v9 = vld [vmem:[%s907_s2 + $0xc4] ss:$16 sps:$4 sm:$0xff]   ;;  %v641_v11 = vld [vmem:[%s907_s2 + $0xc0] ss:$16 sps:$4 sm:$0xff]   ;;  %v642_v12 = vld [vmem:[%s907_s2 + $0xc8] ss:$16 sps:$4 sm:$0xff]  }
   0x4   :  { %v22_v7 = vmul.f32 %v744_v1, %v744_v1  ;;  %240 = vmatpush1.bf16.msra.mxu0 %v635_v5  ;;  %v23_v8 = vmul.f32 %v746_v2, %v746_v2  ;;  %284 = vmatprep.subr.bf16.mxu1 %v639_v10  ;;  %v643_v13 = vld [vmem:[%s907_s2 + $0xa4] ss:$16 sps:$4 sm:$0xff]   ;;  %v645_v14 = vld [vmem:[%s907_s2 + $0xac] ss:$16 sps:$4 sm:$0xff]   ;;  %v647_v15 = vld [vmem:[%s907_s2 + $0xa0] ss:$16 sps:$4 sm:$0xff]  }
   0x5   :  { %241 = vmatprep.subr.bf16.mxu0 %v637_v9  ;;  %v648_v16 = vld [vmem:[%s907_s2 + $0xa8] ss:$16 sps:$4 sm:$0xff]   ;;  %v649_v17 = vld [vmem:[%s907_s2 + $0x84] ss:$16 sps:$4 sm:$0xff]   ;;  %v651_v18 = vld [vmem:[%s907_s2 + $0x8c] ss:$16 sps:$4 sm:$0xff]  }
   0x6   :  { %24 = vadd.xlane.f32.xlu0 %v22_v7  ;;  %v653_v19 = vld [vmem:[%s907_s2 + $0x80] ss:$16 sps:$4 sm:$0xff]   ;;  %v654_v20 = vld [vmem:[%s907_s2 + $0x88] ss:$16 sps:$4 sm:$0xff]   ;;  %v655_v21 = vld [vmem:[%s907_s2 + $0x64] ss:$16 sps:$4 sm:$0xff]  }
   0x7   :  { %285 = vmatpush1.bf16.msra.mxu1 %v642_v12  ;;  %v657_v22 = vld [vmem:[%s907_s2 + $0x6c] ss:$16 sps:$4 sm:$0xff]   ;;  %v659_v23 = vld [vmem:[%s907_s2 + $0x60] ss:$16 sps:$4 sm:$0xff]   ;;  %v660_v24 = vld [vmem:[%s907_s2 + $0x68] ss:$16 sps:$4 sm:$0xff]  }
   0x8   :  { %242 = vmatpush1.bf16.msra.mxu0 %v641_v11  ;;  %286 = vmatprep.subr.bf16.mxu1 %v645_v14  ;;  %v661_v25 = vld [vmem:[%s907_s2 + $0x44] ss:$16 sps:$4 sm:$0xff]   ;;  %v663_v26 = vld [vmem:[%s907_s2 + $0x4c] ss:$16 sps:$4 sm:$0xff]   ;;  %v665_v27 = vld [vmem:[%s907_s2 + $0x40] ss:$16 sps:$4 sm:$0xff]  }
   0x9   :  { %243 = vmatprep.subr.bf16.mxu0 %v643_v13  ;;  %v666_v28 = vld [vmem:[%s907_s2 + $0x48] ss:$16 sps:$4 sm:$0xff]   ;;  %v667_v29 = vld [vmem:[%s907_s2 + $0x24] ss:$16 sps:$4 sm:$0xff]   ;;  %v669_v30 = vld [vmem:[%s907_s2 + $0x2c] ss:$16 sps:$4 sm:$0xff]  }
   0xa   :  { %26 = vadd.xlane.f32.xlu0 %v23_v8  ;;  %v671_v32 = vld [vmem:[%s907_s2 + $0x20] ss:$16 sps:$4 sm:$0xff]   ;;  %v672_v33 = vld [vmem:[%s907_s2 + $0x28] ss:$16 sps:$4 sm:$0xff]   ;;  %v673_v34 = vld [vmem:[%s907_s2 + $0x4] ss:$16 sps:$4 sm:$0xff]  }
   0xb   :  { %287 = vmatpush1.bf16.msra.mxu1 %v648_v16  ;;  %v675_v35 = vld [vmem:[%s907_s2 + $0xc] ss:$16 sps:$4 sm:$0xff]   ;;  %v677_v36 = vld [vmem:[%s907_s2] ss:$16 sps:$4 sm:$0xff]   ;;  %v678_v37 = vld [vmem:[%s907_s2 + $0x8] ss:$16 sps:$4 sm:$0xff]  }
   0xc   :  { %244 = vmatpush1.bf16.msra.mxu0 %v647_v15  ;;  %288 = vmatprep.subr.bf16.mxu1 %v651_v18  ;;  %v542_v47 = vld [vmem:[%s908_s1] ss:$0 sm:$0xff]  ;;  %v679_v52 = vld [vmem:[%s909_s3 + $0x78] sm:$0xff]   ;;  %v681_v54 = vld [vmem:[%s909_s3 + $0x70] sm:$0xff]  }
   0xd   :  { %245 = vmatprep.subr.bf16.mxu0 %v649_v17  ;;  %v680_v53 = vld [vmem:[%s909_s3 + $0x38] sm:$0xff]   ;;  %v682_v55 = vld [vmem:[%s909_s3 + $0x30] sm:$0xff]   ;;  %v683_v56 = vld [vmem:[%s909_s3 + $0x68] sm:$0xff]  }
   0xe   :  { %v684_v57 = vld [vmem:[%s909_s3 + $0x28] sm:$0xff]   ;;  %v685_v58 = vld [vmem:[%s909_s3 + $0x60] sm:$0xff]   ;;  %v687_v60 = vld [vmem:[%s909_s3 + $0x58] sm:$0xff]  }
   0xf   :  { %289 = vmatpush1.bf16.msra.mxu1 %v654_v20  ;;  %v686_v59 = vld [vmem:[%s909_s3 + $0x20] sm:$0xff]   ;;  %v688_v61 = vld [vmem:[%s909_s3 + $0x18] sm:$0xff]   ;;  %v689_v62 = vld [vmem:[%s909_s3 + $0x50] sm:$0xff]  }
  0x10   :  { %246 = vmatpush1.bf16.msra.mxu0 %v653_v19  ;;  %290 = vmatprep.subr.bf16.mxu1 %v657_v22  ;;  %v690_v63 = vld [vmem:[%s909_s3 + $0x10] sm:$0xff]   ;;  %v691_v0 = vld [vmem:[%s909_s3 + $0x48] sm:$0xff]   ;;  %v693_v4 = vld [vmem:[%s909_s3 + $0x40] sm:$0xff]  }
  0x11   :  { %247 = vmatprep.subr.bf16.mxu0 %v655_v21  ;;  %v692_v3 = vld [vmem:[%s909_s3 + $0x8] sm:$0xff]   ;;  %v694_v5 = vld [vmem:[%s909_s3] sm:$0xff]  }
  0x13   :  { %291 = vmatpush1.bf16.msra.mxu1 %v660_v24 }
  0x14   :  { %248 = vmatpush1.bf16.msra.mxu0 %v659_v23  ;;  %292 = vmatprep.subr.bf16.mxu1 %v663_v26 }
  0x15   :  { %249 = vmatprep.subr.bf16.mxu0 %v661_v25 }
  0x17   :  { %293 = vmatpush1.bf16.msra.mxu1 %v666_v28 }
  0x18   :  { %250 = vmatpush1.bf16.msra.mxu0 %v665_v27  ;;  %294 = vmatprep.subr.bf16.mxu1 %v669_v30 }
  0x19   :  { %251 = vmatprep.subr.bf16.mxu0 %v667_v29 }
  0x1b   :  { %295 = vmatpush1.bf16.msra.mxu1 %v672_v33 }
  0x1c   :  { %252 = vmatpush1.bf16.msra.mxu0 %v671_v32  ;;  %296 = vmatprep.subr.bf16.mxu1 %v675_v35 }
  0x1d   :  { %253 = vmatprep.subr.bf16.mxu0 %v673_v34 }
  0x1f   :  { %297 = vmatpush1.bf16.msra.mxu1 %v678_v37 }
  0x20   :  { %254 = vmatpush1.bf16.msra.mxu0 %v677_v36 }
  0x21   :  { %608 = vmatprep.subr.bf16.mxu0 %v679_v52 }
  0x8f   :  { %v25_v38 = vpop.xlane.xlu0 %24 }
  0x90   :  { %v29_v39 = vmul.f32 0.0078125, %v25_v38 }
  0x92   :  { %v31_v40 = vadd.f32 1e-06, %v29_v39 }
  0x93   :  { %v27_v41 = vpop.xlane.xlu0 %26 }
  0x94   :  { %695 = vrsqrt.f32 %v31_v40  ;;  %v30_v42 = vmul.f32 0.0078125, %v27_v41 }
  0x96   :  { %v32_v43 = vadd.f32 1e-06, %v30_v42 }
  0x98   :  { %697 = vrsqrt.f32 %v32_v43 }
  0xa1   :  { %v696_v44 = vpop.eup %695 }
  0xa2   :  { %v35_v45 = vmul.f32 %v696_v44, %v744_v1 }
  0xa4   :  { %v44_v49 = vmul.f32 %v542_v47, %v35_v45 }
  0xa5   :  { %v698_v46 = vpop.eup %697 }
  0xa6   :  { %v36_v48 = vmul.f32 %v698_v46, %v746_v2 }
  0xa8   :  { %v45_v50 = vmul.f32 %v542_v47, %v36_v48 }
  0xaa   :  { %v46_v51 = vpack.c.bf16 %v45_v50, %v44_v49 }
  0xac   :  { %272 = vmatmul.mubr.bf16.vlgmr.msra.gmra.mxu0 %v46_v51  ;;  %315 = vmatmul.mubr.bf16.vlgmr.msra.gmra.mxu1 %v46_v51 }
  0xad   :  { %609 = vmatpush3.bf16.msra.mxu0 %v680_v53 }
  0xae   :  { %610 = vmatprep.subr.bf16.mxu0 %v681_v54 }
  0xb1   :  { %611 = vmatpush3.bf16.msra.mxu0 %v682_v55 }
  0xb2   :  { %612 = vmatprep.subr.bf16.mxu0 %v683_v56 }
  0xb5   :  { %613 = vmatpush3.bf16.msra.mxu0 %v684_v57 }
  0xb6   :  { %614 = vmatprep.subr.bf16.mxu0 %v685_v58 }
  0xb9   :  { %615 = vmatpush3.bf16.msra.mxu0 %v686_v59 }
  0xba   :  { %616 = vmatprep.subr.bf16.mxu0 %v687_v60 }
  0xbd   :  { %617 = vmatpush3.bf16.msra.mxu0 %v688_v61 }
  0xbe   :  { %618 = vmatprep.subr.bf16.mxu0 %v689_v62 }
  0xc1   :  { %619 = vmatpush3.bf16.msra.mxu0 %v690_v63 }
  0xc2   :  { %620 = vmatprep.subr.bf16.mxu0 %v691_v0 }
  0xc5   :  { %621 = vmatpush3.bf16.msra.mxu0 %v692_v3 }
  0xc6   :  { %622 = vmatprep.subr.bf16.mxu0 %v693_v4 }
  0xc9   :  { %623 = vmatpush3.bf16.msra.mxu0 %v694_v5 }
 0x16c   :  { %v273_v6 = vpop.f32.mrf.mxu0  ;;  %v316_v22 = vpop.f32.mrf.mxu1 }
 0x16d   :  { %v575_v7 = vmul.f32 -1.442695, %v273_v6 }
 0x16e   :  { %v275_v8 = vpop.f32.mrf.mxu0  ;;  %v318_v23 = vpop.f32.mrf.mxu1 }
 0x16f   :  { %699 = vpow2.f32 %v575_v7  ;;  %v576_v9 = vmul.f32 -1.442695, %v275_v8 }
 0x170   :  { %v277_v10 = vpop.f32.mrf.mxu0  ;;  %v320_v27 = vpop.f32.mrf.mxu1 }
 0x171   :  { %701 = vpow2.f32 %v576_v9  ;;  %v577_v11 = vmul.f32 -1.442695, %v277_v10 }
 0x172   :  { %v279_v12 = vpop.f32.mrf.mxu0  ;;  %v322_v34 = vpop.f32.mrf.mxu1 }
 0x173   :  { %703 = vpow2.f32 %v577_v11  ;;  %v578_v13 = vmul.f32 -1.442695, %v279_v12 }
 0x175   :  { %705 = vpow2.f32 %v578_v13 }
 0x17c   :  { %v700_v14 = vpop.eup %699 }
 0x17d   :  { %v337_v16 = vadd.f32 1.0, %v700_v14 }
 0x17e   :  { %v702_v15 = vpop.eup %701 }
 0x17f   :  { %v338_v17 = vadd.f32 1.0, %v702_v15 }
 0x180   :  { %v704_v18 = vpop.eup %703 }
 0x181   :  { %707 = vrcp.f32 %v338_v17  ;;  %v339_v19 = vadd.f32 1.0, %v704_v18 }
 0x182   :  { %v706_v20 = vpop.eup %705  ;;  %709 = vrcp.f32 %v337_v16 }
 0x183   :  { %711 = vrcp.f32 %v339_v19  ;;  %v340_v21 = vadd.f32 1.0, %v706_v20 }
 0x185   :  { %713 = vrcp.f32 %v340_v21 }
 0x18e   :  { %v708_v24 = vpop.eup %707 }
 0x18f   :  { %v710_v25 = vpop.eup %709  ;;  %v350_v28 = vmul.f32 %v708_v24, %v275_v8 }
 0x190   :  { %v712_v26 = vpop.eup %711  ;;  %v349_v31 = vmul.f32 %v710_v25, %v273_v6 }
 0x191   :  { %v351_v29 = vmul.f32 %v712_v26, %v277_v10  ;;  %v354_v35 = vmul.f32 %v350_v28, %v318_v23 }
 0x192   :  { %v714_v30 = vpop.eup %713  ;;  %v353_v37 = vmul.f32 %v349_v31, %v316_v22 }
 0x193   :  { %v352_v32 = vmul.f32 %v714_v30, %v279_v12  ;;  %v355_v33 = vmul.f32 %v351_v29, %v320_v27 }
 0x195   :  { %v356_v36 = vmul.f32 %v352_v32, %v322_v34  ;;  %v357_v39 = vpack.c.bf16 %v355_v33, %v353_v37 }
 0x197   :  { %v358_v38 = vpack.c.bf16 %v356_v36, %v354_v35 }
 0x199   :  { %519 = vmatprep.mubr.bf16.mxu0 %v358_v38 }
 0x19a   :  { %520 = vmatmul.mubr.bf16.vlgmr.msra.gmra.mxu0 %v357_v39 }
 0x25a   :  { %v624_v40 = vpop.f32.mrf.mxu0 }
 0x25c   :  { %v625_v41 = vpop.f32.mrf.mxu0 }
 0x25d   :  { %v626_v43 = vadd.f32 %v625_v41, %v624_v40 }
 0x25e   :  { %v627_v42 = vpop.f32.mrf.mxu0 }
 0x25f   :  { %v522_v46 = vadd.f32 %v626_v43, %v744_v1 }
 0x260   :  { %v628_v44 = vpop.f32.mrf.mxu0 }
 0x261   :  { %v629_v45 = vadd.f32 %v628_v44, %v627_v42 }
 0x263   :  { %v525_v47 = vadd.f32 %v629_v45, %v746_v2 }
 0x265   :  { %v606_v48 = vpack.c.bf16 %v525_v47, %v522_v46 }
 0x267   :  { %607 = vst [vmem:[%s910_s4] sm:$0xff] %v606_v48  }

</bundles_post_ra>
